<compile_context>
chip_gen: v7x
topology: tpu7x:2x2x1
jax: 0.10.0
libtpu: 0.0.40
codegen_flags: <defaults>
</compile_context>

<pallas_src>
import math
from functools import partial

import jax
import jax.numpy as jnp
from jax import lax
from jax.experimental import pallas as pl
from jax.experimental.pallas import tpu as pltpu

KERNEL_EPS = 1e-4            # eps used inside softmax_kernel
_NEG = -1e30                 # "minus infinity" that stays finite in f32
_LANE = 128                  # TPU lane width; feature dim is padded to this
_VMEM_LIMIT = 32 * 1024 * 1024   # safe on v7x (64 MiB phys) and v5e/v6e


def _round_up(x, m):
    return ((x + m - 1) // m) * m


def _seq_tile(n, max_tile=512):
    """Largest power-of-two tile <= max_tile that divides n, else the whole axis."""
    if n <= max_tile:
        return n
    t = max_tile
    while t >= 8:
        if n % t == 0:
            return t
        t //= 2
    return n  # TODO(synk): ragged N with no pow-2 divisor falls back to one big block


# ----------------------------------------------------------------------------
# Pallas kernels
# ----------------------------------------------------------------------------
def _kmax_kernel(k_ref, p_ref, o_ref, *, m_true, scale):
    """Running GLOBAL max of the projected key logits (the stabilizer that
    softmax_kernel(is_query=False) subtracts).  The (1,1) output block stays
    resident in VMEM across the whole (b*h, seq-tile) grid."""

    @pl.when(jnp.logical_and(pl.program_id(0) == 0, pl.program_id(1) == 0))
    def _():
        o_ref[...] = jnp.full(o_ref.shape, _NEG, o_ref.dtype)

    k_dash = lax.dot_general(                        # [TN, Mp]; bf16 MXU, f32 acc
        k_ref[0], p_ref[...],
        dimension_numbers=(((1,), (1,)), ((), ())),
        preferred_element_type=jnp.float32) * scale
    if m_true < k_dash.shape[-1]:                    # ignore zero-padded features
        col = lax.broadcasted_iota(jnp.int32, k_dash.shape, 1)
        k_dash = jnp.where(col < m_true, k_dash, _NEG)
    o_ref[...] = jnp.maximum(o_ref[...], jnp.max(k_dash))


def _kreduce_kernel(k_ref, v_ref, p_ref, gmax_ref, ctx_ref, ksum_ref, *,
                    m_true, scale, ratio, eps):
    """softmax_kernel(k, is_query=False) + the key-side sums of linear_attention,
    accumulated over sequence tiles into VMEM-resident f32 outputs."""

    @pl.when(pl.program_id(1) == 0)
    def _():
        ctx_ref[...] = jnp.zeros_like(ctx_ref)
        ksum_ref[...] = jnp.zeros_like(ksum_ref)

    k = k_ref[0]                                                 # [TN, D]
    k_dash = lax.dot_general(
        k, p_ref[...], dimension_numbers=(((1,), (1,)), ((), ())),
        preferred_element_type=jnp.float32) * scale
    kf = k.astype(jnp.float32)
    k_diag = jnp.sum(kf * kf, axis=-1, keepdims=True) * (0.5 * scale * scale)
    # single fused broadcast-subtract: kd - (k_diag + global_max)
    k_prime = (jnp.exp(k_dash - (k_diag + gmax_ref[0, 0])) + eps) * ratio
    if m_true < k_prime.shape[-1]:
        col = lax.broadcasted_iota(jnp.int32, k_prime.shape, 1)
        k_prime = jnp.where(col < m_true, k_prime, 0.0)

    ksum_ref[0] += jnp.sum(k_prime, axis=0, keepdims=True)       # [1, Mp]
    # context += k'^T @ v without an explicit transpose (contract axis 0 vs 0).
    ctx_ref[0] += lax.dot_general(
        k_prime.astype(v_ref.dtype), v_ref[0],
        dimension_numbers=(((0,), (0,)), ((), ())),
        preferred_element_type=jnp.float32)


def _qattn_kernel(q_ref, p_ref, ctx_ref, ksum_ref, o_ref, *,
                  m_true, scale, ratio, eps, mm_dtype):
    """softmax_kernel(q, is_query=True) + the query side of linear_attention for
    one (batch*head, sequence-tile) block."""
    q = q_ref[0]                                                 # [TNq, D]
    q_dash = lax.dot_general(
        q, p_ref[...], dimension_numbers=(((1,), (1,)), ((), ())),
        preferred_element_type=jnp.float32) * scale
    qf = q.astype(jnp.float32)
    q_diag = jnp.sum(qf * qf, axis=-1, keepdims=True) * (0.5 * scale * scale)

    if m_true < q_dash.shape[-1]:
        col = lax.broadcasted_iota(jnp.int32, q_dash.shape, 1)
        row_max = jnp.max(jnp.where(col < m_true, q_dash, _NEG),
                          axis=-1, keepdims=True)
    else:
        col = None
        row_max = jnp.max(q_dash, axis=-1, keepdims=True)

    q_prime = (jnp.exp(q_dash - (q_diag + row_max)) + eps) * ratio
    if col is not None:
        q_prime = jnp.where(col < m_true, q_prime, 0.0)

    denom = jnp.sum(q_prime * ksum_ref[0], axis=-1, keepdims=True)   # [TNq, 1]
    d_inv = pl.reciprocal(denom, approx=True)                        # EUP slot
    out = jnp.dot(q_prime.astype(mm_dtype), ctx_ref[0].astype(mm_dtype),
                  preferred_element_type=jnp.float32) * d_inv
    o_ref[0] = out.astype(o_ref.dtype)


# ----------------------------------------------------------------------------
# Wrapper
# ----------------------------------------------------------------------------
def performer_attention(q, k, v, proj, *, seq_tile=512,
                        compute_dtype=jnp.bfloat16, vmem_limit=_VMEM_LIMIT):
    """Performer softmax-kernel linear attention (non-causal), q/k/v: [B,H,N,D{v}]."""
    B, H, N, D = q.shape
    Dv = v.shape[-1]
    M = proj.shape[0]
    Mp = max(_LANE, _round_up(M, _LANE))       # lane-aligned padded feature count
    BH = B * H
    TN = _seq_tile(N, seq_tile)
    NT = N // TN

    out_dtype = q.dtype
    scale = float(D) ** -0.25                  # data_normalizer
    ratio = float(M) ** -0.5                   # uses the TRUE feature count

    qc = q.reshape(BH, N, D).astype(compute_dtype)
    kc = k.reshape(BH, N, D).astype(compute_dtype)
    vc = v.reshape(BH, N, Dv).astype(compute_dtype)
    pc = jnp.pad(proj, ((0, Mp - M), (0, 0))).astype(compute_dtype)

    cp_red = pltpu.CompilerParams(dimension_semantics=("arbitrary", "arbitrary"),
                                  vmem_limit_bytes=vmem_limit)
    cp_k = pltpu.CompilerParams(dimension_semantics=("parallel", "arbitrary"),
                                vmem_limit_bytes=vmem_limit)
    cp_q = pltpu.CompilerParams(dimension_semantics=("parallel", "parallel"),
                                vmem_limit_bytes=vmem_limit)

    # Pass A: global max of projected key logits (cheap bf16 duplicate of k@P^T).
    gmax = pl.pallas_call(
        partial(_kmax_kernel, m_true=M, scale=scale),
        out_shape=jax.ShapeDtypeStruct((1, 1), jnp.float32),
        grid=(BH, NT),
        in_specs=[
            pl.BlockSpec((1, TN, D), lambda b, t: (b, t, 0)),
            pl.BlockSpec((Mp, D), lambda b, t: (0, 0)),
        ],
        out_specs=pl.BlockSpec((1, 1), lambda b, t: (0, 0)),
        compiler_params=cp_red,
    )(kc, pc)

    # Pass B: key feature map + k-side reductions (context, k_cumsum) per (b*h).
    ctx, ksum = pl.pallas_call(
        partial(_kreduce_kernel, m_true=M, scale=scale, ratio=ratio,
                eps=KERNEL_EPS),
        out_shape=(jax.ShapeDtypeStruct((BH, Mp, Dv), jnp.float32),
                   jax.ShapeDtypeStruct((BH, 1, Mp), jnp.float32)),
        grid=(BH, NT),
        in_specs=[
            pl.BlockSpec((1, TN, D), lambda b, t: (b, t, 0)),
            pl.BlockSpec((1, TN, Dv), lambda b, t: (b, t, 0)),
            pl.BlockSpec((Mp, D), lambda b, t: (0, 0)),
            pl.BlockSpec(memory_space=pltpu.MemorySpace.SMEM),   # gmax scalar
        ],
        out_specs=(pl.BlockSpec((1, Mp, Dv), lambda b, t: (b, 0, 0)),
                   pl.BlockSpec((1, 1, Mp), lambda b, t: (b, 0, 0))),
        compiler_params=cp_k,
    )(kc, vc, pc, gmax)

    # Pass C: query feature map + normalized output, fully parallel grid.
    # TODO(synk): Dv < 128 keeps these output stores lane-masked; folding heads
    # into the last dim (lane-dense output) is a further v5e-oriented win.
    out = pl.pallas_call(
        partial(_qattn_kernel, m_true=M, scale=scale, ratio=ratio,
                eps=KERNEL_EPS, mm_dtype=compute_dtype),
        out_shape=jax.ShapeDtypeStruct((BH, N, Dv), out_dtype),
        grid=(BH, NT),
        in_specs=[
            pl.BlockSpec((1, TN, D), lambda b, t: (b, t, 0)),
            pl.BlockSpec((Mp, D), lambda b, t: (0, 0)),
            pl.BlockSpec((1, Mp, Dv), lambda b, t: (b, 0, 0)),
            pl.BlockSpec((1, 1, Mp), lambda b, t: (b, 0, 0)),
        ],
        out_specs=pl.BlockSpec((1, TN, Dv), lambda b, t: (b, t, 0)),
        compiler_params=cp_q,
    )(qc, pc, ctx, ksum)

    return out.reshape(B, H, N, Dv)


# ----------------------------------------------------------------------------
# Deterministic parameter init (gaussian orthogonal random matrix)
# ----------------------------------------------------------------------------
def gaussian_orthogonal_random_matrix(key, nb_rows, nb_columns, scaling=0):
    nb_full_blocks = nb_rows // nb_columns
    keys = jax.random.split(key, nb_full_blocks + 2)
    blocks = []
    for i in range(nb_full_blocks):
        unstructured = jax.random.normal(keys[i], (nb_columns, nb_columns), jnp.float32)
        q_mat, _ = jnp.linalg.qr(unstructured)
        blocks.append(q_mat.T)
    remaining = nb_rows - nb_full_blocks * nb_columns
    if remaining > 0:
        unstructured = jax.random.normal(
            keys[nb_full_blocks], (nb_columns, nb_columns), jnp.float32)
        q_mat, _ = jnp.linalg.qr(unstructured)
        blocks.append(q_mat.T[:remaining])
    final = jnp.concatenate(blocks, axis=0)
    if scaling == 0:
        multiplier = jnp.linalg.norm(
            jax.random.normal(keys[-1], (nb_rows, nb_columns), jnp.float32), axis=1)
    elif scaling == 1:
        multiplier = math.sqrt(float(nb_columns)) * jnp.ones((nb_rows,), jnp.float32)
    else:
        raise ValueError(f"Invalid scaling {scaling}")
    return multiplier[:, None] * final


class ProjectionUpdater:
    """Plain-Python mirror of the PyTorch ProjectionUpdater bookkeeping.

    nb_features defaults to int(dim_heads * log(dim_heads)) exactly as in the
    reference; the kernels zero-pad the projection to a multiple of 128 lanes
    internally and mask, so module semantics are unchanged.  Picking nb_features
    as a multiple of 128 compiles the mask out entirely."""

    def __init__(self, dim_heads, feature_redraw_interval, key, nb_features=None):
        self.dim_heads = dim_heads
        self.nb_features = nb_features or int(dim_heads * math.log(dim_heads))
        self.feature_redraw_interval = feature_redraw_interval
        self.calls_since_last_redraw = 0
        self._key = key
        self.projection_matrix = gaussian_orthogonal_random_matrix(
            key, self.nb_features, dim_heads, scaling=0)

    def fix_projections_(self):
        self.feature_redraw_interval = None

    def redraw_projections(self, training=True):
        if not training:
            return
        if (self.feature_redraw_interval is not None
                and self.calls_since_last_redraw >= self.feature_redraw_interval):
            self._key, sub = jax.random.split(self._key)
            self.projection_matrix = gaussian_orthogonal_random_matrix(
                sub, self.nb_features, self.dim_heads, scaling=0)
            self.calls_since_last_redraw = 0
            return
        self.calls_since_last_redraw += 1

    def performer_forward(self, q, k, v):
        return performer_attention(q, k, v, self.projection_matrix)

    def forward(self, x):
        # Matches reference: ProjectionUpdater.forward raises NotImplemented.
        raise NotImplementedError
        # TODO(synk): reference forward is intentionally unimplemented; use
        # performer_forward for the wrapped Performer's compute.


# ----------------------------------------------------------------------------
# Pure-JAX f32 reference (for correctness check)
# ----------------------------------------------------------------------------
def performer_reference(q, k, v, proj):
    d = q.shape[-1]
    scale = d ** (-0.25)
    ratio = proj.shape[0] ** (-0.5)
    q_dash = jnp.einsum("bhnd,md->bhnm", q * scale, proj)
    k_dash = jnp.einsum("bhnd,md->bhnm", k * scale, proj)
    q_diag = jnp.sum(q * q, -1, keepdims=True) * 0.5 * scale * scale
    k_diag = jnp.sum(k * k, -1, keepdims=True) * 0.5 * scale * scale
    qp = ratio * (jnp.exp(q_dash - q_diag - jnp.max(q_dash, -1, keepdims=True)) + KERNEL_EPS)
    kp = ratio * (jnp.exp(k_dash - k_diag - jnp.max(k_dash)) + KERNEL_EPS)
    k_cumsum = kp.sum(-2)
    d_inv = 1.0 / jnp.einsum("bhnm,bhm->bhn", qp, k_cumsum)
    context = jnp.einsum("bhnm,bhne->bhme", kp, v)
    return jnp.einsum("bhme,bhnm,bhn->bhne", context, qp, d_inv)


if __name__ == "__main__":
    B, H, N, D = 2, 2, 8, 32          # dim_heads = 32 -> nb_features = 110 (padded to 128)
    key = jax.random.PRNGKey(0)
    kq, kk, kv, kproj = jax.random.split(key, 4)
    q = jax.random.normal(kq, (B, H, N, D), jnp.float32)
    k = jax.random.normal(kk, (B, H, N, D), jnp.float32)
    v = jax.random.normal(kv, (B, H, N, D), jnp.float32)

    updater = ProjectionUpdater(dim_heads=D, feature_redraw_interval=1000, key=kproj)
    updater.redraw_projections(training=True)   # bookkeeping path

    out = jax.block_until_ready(updater.performer_forward(q, k, v))
    ref = performer_reference(q, k, v, updater.projection_matrix)

    assert out.shape == (B, H, N, D)
    # bf16 MXU inputs + approx reciprocal -> loosened tolerance vs f32 reference.
    err = float(jnp.max(jnp.abs(out.astype(jnp.float32) - ref))
                / (jnp.max(jnp.abs(ref)) + 1e-6))
    assert err < 5e-2, f"mismatch vs JAX reference: rel-max-err={err:.3e}"
    print("KERNEL_OK")
</pallas_src>

<mosaic_0001>
module attributes {stable_mosaic.version = 11 : i64} {
  func.func @_kmax_kernel(%arg0: i32, %arg1: i32, %arg2: memref<1x8x32xbf16, #tpu.memory_space<vmem>>, %arg3: memref<128x32xbf16, #tpu.memory_space<vmem>>, %arg4: memref<1x1xf32, #tpu.memory_space<vmem>>) attributes {dimension_semantics = [#tpu.dimension_semantics<arbitrary>, #tpu.dimension_semantics<arbitrary>], iteration_bounds = array<i64: 4, 1>, scalar_prefetch = 0 : i64, scratch_operands = 0 : i64, tpu.core_type = #tpu.core_type<tc>, window_params = [{transform_indices = @transform_0, window_bounds = array<i64: 1, 8, 32>}, {pipeline_mode = #tpu.pipeline_mode<synchronous>, transform_indices = @transform_1, window_bounds = array<i64: 128, 32>}, {pipeline_mode = #tpu.pipeline_mode<synchronous>, transform_indices = @transform_2, window_bounds = array<i64: 1, 1>}]} {
    %c0_i32 = arith.constant 0 : i32
    %0 = arith.cmpi eq, %arg0, %c0_i32 : i32
    %c0_i32_0 = arith.constant 0 : i32
    %1 = arith.cmpi eq, %arg1, %c0_i32_0 : i32
    %2 = arith.andi %0, %1 : i1
    %3 = arith.extui %2 : i1 to i32
    %c0_i32_1 = arith.constant 0 : i32
    %4 = arith.cmpi ne, %3, %c0_i32_1 : i32
    scf.if %4 {
      %cst_13 = arith.constant -1.000000e+30 : f32
      %24 = vector.broadcast %cst_13 : f32 to vector<1x1xf32>
      %c0_14 = arith.constant 0 : index
      %c0_15 = arith.constant 0 : index
      %25 = vector.load %arg4[%c0_14, %c0_15] : memref<1x1xf32, #tpu.memory_space<vmem>>, vector<1x1xf32>
      tpu.vector_store %arg4[%c0_14, %c0_15], %24 {strides = array<i32>} : memref<1x1xf32, #tpu.memory_space<vmem>>, vector<1x1xf32>,
    } else {
    }
    %c0 = arith.constant 0 : index
    %c0_2 = arith.constant 0 : index
    %c0_3 = arith.constant 0 : index
    %5 = vector.load %arg2[%c0, %c0_2, %c0_3] : memref<1x8x32xbf16, #tpu.memory_space<vmem>>, vector<1x8x32xbf16>
    %6 = vector.shape_cast %5 : vector<1x8x32xbf16> to vector<8x32xbf16>
    %c0_4 = arith.constant 0 : index
    %c0_5 = arith.constant 0 : index
    %7 = vector.load %arg3[%c0_4, %c0_5] : memref<128x32xbf16, #tpu.memory_space<vmem>>, vector<128x32xbf16>
    %cst = arith.constant dense<0.000000e+00> : vector<8x128xf32>
    %8 = tpu.matmul %6, %7, %cst {dimension_numbers = #tpu.dot_dimension_numbers<[1], [1], [0], [0], [0, 0, 1, 0], [], []>} : vector<8x32xbf16>, vector<128x32xbf16>, vector<8x128xf32> -> vector<8x128xf32>
    %cst_6 = arith.constant 0.420448214 : f32
    %9 = vector.broadcast %cst_6 : f32 to vector<8x128xf32>
    %10 = arith.mulf %8, %9 : vector<8x128xf32>
    %11 = tpu.iota {dimensions = array<i32: 1>} : vector<8x128xi32>
    %c110_i32 = arith.constant 110 : i32
    %12 = vector.broadcast %c110_i32 : i32 to vector<8x128xi32>
    %13 = arith.cmpi slt, %11, %12 : vector<8x128xi32>
    %cst_7 = arith.constant -1.000000e+30 : f32
    %14 = vector.broadcast %cst_7 : f32 to vector<8x128xf32>
    %15 = arith.select %13, %10, %14 : vector<8x128xi1>, vector<8x128xf32>
    %c0_8 = arith.constant 0 : index
    %c0_9 = arith.constant 0 : index
    %16 = vector.load %arg4[%c0_8, %c0_9] : memref<1x1xf32, #tpu.memory_space<vmem>>, vector<1x1xf32>
    %17 = vector.shape_cast %15 : vector<8x128xf32> to vector<1x8x128xf32>
    %cst_10 = arith.constant dense<0xFF800000> : vector<1xf32>
    %18 = vector.multi_reduction <maximumf>, %17, %cst_10 [1, 2] : vector<1x8x128xf32> to vector<1xf32>
    %19 = vector.shape_cast %18 : vector<1xf32> to vector<1x1x1xf32>
    %20 = vector.extract %19[0, 0, 0] : f32 from vector<1x1x1xf32>
    %21 = vector.broadcast %20 : f32 to vector<1x1xf32>
    %22 = arith.maximumf %16, %21 : vector<1x1xf32>
    %c0_11 = arith.constant 0 : index
    %c0_12 = arith.constant 0 : index
    %23 = vector.load %arg4[%c0_11, %c0_12] : memref<1x1xf32, #tpu.memory_space<vmem>>, vector<1x1xf32>
    tpu.vector_store %arg4[%c0_11, %c0_12], %22 {strides = array<i32>} : memref<1x1xf32, #tpu.memory_space<vmem>>, vector<1x1xf32>,
    return
  }
  func.func @transform_0(%arg0: i32, %arg1: i32) -> (i32, i32, i32) {
    %c0_i32 = arith.constant 0 : i32
    %c0_i32_0 = arith.constant 0 : i32
    return %arg0, %arg1, %c0_i32 : i32, i32, i32
  }
  func.func @transform_1(%arg0: i32, %arg1: i32) -> (i32, i32) {
    %c0_i32 = arith.constant 0 : i32
    %c0_i32_0 = arith.constant 0 : i32
    %c0_i32_1 = arith.constant 0 : i32
    return %c0_i32, %c0_i32_0 : i32, i32
  }
  func.func @transform_2(%arg0: i32, %arg1: i32) -> (i32, i32) {
    %c0_i32 = arith.constant 0 : i32
    %c0_i32_0 = arith.constant 0 : i32
    %c0_i32_1 = arith.constant 0 : i32
    return %c0_i32, %c0_i32_0 : i32, i32
  }
}

</mosaic_0001>

<bundles_post_ra>
// kernel: tpu_custom_call.1
= control target key start
LH: loop header
LB: loop body
LE: loop exit
PB: predicated region body
PF: predicated region fallthrough
CT: control target
= control target key end

     0   :  { %7 = vsyncpa [#allocation3], 0  ;;  %s527_s9 = smov 0   ;;  %s529_s10 = smov 0   ;;  %s622_s0 = inlined_call_operand.vmem [shape: bf16[4,8,32], index: 0, kind: input, shape index: {}]   ;;  %s623_s1 = inlined_call_operand.vmem [shape: bf16[128,32], index: 1, kind: input, shape index: {}]   ;;  %s624_s2 = inlined_call_operand.hbm [shape: f32[1,1], index: 2, kind: output, shape index: {}]  }
   0x1   :  { %s531_s11 = smov 0  }
   0x2 LB: > { %s361_s12 = sadd.s32 4294967295, %s506_s11   ;;  %s25_s13 = sadd.s32 1, %s502_s10  ;;  %s506_s11 = sphi %s531_s11, %s13_s11   ;;  %s502_s10 = sphi %s529_s10, %s627_s10   ;;  %s498_s9 = sphi %s527_s9, %s626_s9  }
   0x3   : > { %p27_p0 = scmp.ge.s32.totalorder %s25_s13, 4  ;;  %p364_p1 = scmp.ge.s32.totalorder %s506_s11, 1 }
   0x4   : > { %p124_p2 = scmp.lt.s32.totalorder %s506_s11, 5 }
   0x5   : > { %s629_s13 = smov (%p27_p0, %s25_s13), 0 }
   0x6   : > { %p125_p3 = pnand %p364_p1, %p124_p2 }
   0x7   : > { %p143_p4 = scmp.lt.s32.totalorder (!%p125_p3), %s498_s9, 3  ;;  %p151_p5 = scmp.eq.s32.totalorder (!%p125_p3), %s498_s9, 0 }
   0x8   : > { %128 = sbr.rel (%p125_p3) target bundleno = 524 (0x20c), region = 28 }
   0xf   : > { %s631_s9 = smov (!%p143_p4, %s498_s9), 3  ;;  %156 = sbr.rel (!%p151_p5) target bundleno = 22 (0x16), region = 32 }
  0x10   : > { %s365_s14 = sshll.u32 %s631_s9, 2  ;;  %vm157_vm0 = vcmask (%p151_p5), 0   ;;  %v508_v0 = vmov (%p151_p5), -1e+30  }
  0x11   : > { %s549_s17 = scalar_lea.vmem %s622_s0, %s365_s14  ;;  %158 = vst.msk [vmem:[#allocation2] sm:$0x1] (%p151_p5), %vm157_vm0, %v508_v0 }
  0x16 PF: > { %v446_v1 = vld [vmem:[%s623_s1] sm:$0xff]   ;;  %v509_v2 = vmov 0.0   ;;  %vm216_vm1 = vcmask 261120   ;;  %v447_v4 = vld [vmem:[%s623_s1 + $0x8] sm:$0xff]   ;;  %vm510_vm2 = vmmov 0   ;;  %v448_v6 = vld [vmem:[%s623_s1 + $0x10] sm:$0xff]   ;;  %v285_v19 = vlaneseq }
  0x17   : > { %390 = vmatprep.subr.bf16.mxu0 %v509_v2  ;;  %v221_v3 = vsel %vm216_vm1, %v446_v1, 0  ;;  %v224_v5 = vsel %vm216_vm1, %v447_v4, 0  ;;  %406 = vmatprep.mubr.msk.bf16.mxu0 %vm510_vm2, %v509_v2  ;;  %v227_v7 = vsel %vm216_vm1, %v448_v6, 0  ;;  %v449_v8 = vld [vmem:[%s623_s1 + $0x18] sm:$0xff]   ;;  %v450_v10 = vld [vmem:[%s623_s1 + $0x20] sm:$0xff]   ;;  %v451_v12 = vld [vmem:[%s623_s1 + $0x28] sm:$0xff]  }
  0x18   : > { %391 = vmatpush3.bf16.xpose.msra.mxu0 %v221_v3  ;;  %v230_v9 = vsel %vm216_vm1, %v449_v8, 0  ;;  %v233_v11 = vsel %vm216_vm1, %v450_v10, 0  ;;  %v236_v13 = vsel %vm216_vm1, %v451_v12, 0  ;;  %v452_v14 = vld [vmem:[%s623_s1 + $0x30] sm:$0xff]   ;;  %v453_v16 = vld [vmem:[%s623_s1 + $0x38] sm:$0xff]   ;;  %v286_v20 = vand.u32 127, %v285_v19 }
  0x19   : > { %392 = vmatprep.subr.bf16.mxu0 %v509_v2  ;;  %v239_v15 = vsel %vm216_vm1, %v452_v14, 0  ;;  %v242_v17 = vsel %vm216_vm1, %v453_v16, 0  ;;  %v159_v18 = vld [vmem:[%s549_s17] sm:$0xf]  ;;  %s511_s6 = smov [#allocation2]   ;;  %vm301_vm4 = vcmask 0  }
  0x1a   : > { %vm287_vm3 = vcmp.lt.s32.totalorder %v286_v20, 110  ;;  %v289_v34 = vld [vmem:[#allocation2] sm:$0x1]  ;;  %s310_s7 = sshll.u32 %s511_s6, 4  ;;  %p587_p6 = scmp.eq.s32.totalorder %s361_s12, 3  ;;  %s311_s7 = int_to_ptr.vmem [resolvable:$true] %s310_s7 }
  0x1b   : > { %s454_s14 = scalar_lea.vmem %s311_s7, 16  ;;  %s460_s15 = scalar_lea.vmem %s311_s7, 32 }
  0x1c   : > { %p455_p7 = scmp.ne.s32.totalorder %s311_s7, %s454_s14  ;;  %p461_p10 = scmp.lt.s32.totalorder %s311_s7, %s311_s7 }
  0x1d   : > { %p462_p11 = scmp.lt.s32.totalorder %s460_s15, %s454_s14 }
  0x1e   : > { %p456_p8 = pnand %p455_p7, %p587_p6 }
  0x1f   : > { %p463_p12 = por %p462_p11, %p461_p10 }
  0x20   : > { %393 = vmatpush3.bf16.xpose.msra.mxu0 %v224_v5  ;;  %p457_p9 = pneg %p456_p8 }
  0x21   : > { %394 = vmatprep.subr.bf16.mxu0 %v509_v2 }
  0x22   : > { %p464_p13 = pnand %p463_p12, %p457_p9 }
  0x28   : > { %395 = vmatpush3.bf16.xpose.msra.mxu0 %v227_v7 }
  0x29   : > { %396 = vmatprep.subr.bf16.mxu0 %v509_v2 }
  0x30   : > { %397 = vmatpush3.bf16.xpose.msra.mxu0 %v230_v9 }
  0x31   : > { %398 = vmatprep.subr.bf16.mxu0 %v509_v2 }
  0x38   : > { %399 = vmatpush3.bf16.xpose.msra.mxu0 %v233_v11 }
  0x39   : > { %400 = vmatprep.subr.bf16.mxu0 %v509_v2 }
  0x40   : > { %401 = vmatpush3.bf16.xpose.msra.mxu0 %v236_v13 }
  0x41   : > { %402 = vmatprep.subr.bf16.mxu0 %v509_v2 }
  0x48   : > { %403 = vmatpush3.bf16.xpose.msra.mxu0 %v239_v15 }
  0x49   : > { %404 = vmatprep.subr.bf16.mxu0 %v509_v2 }
  0x50   : > { %405 = vmatpush3.bf16.xpose.msra.mxu0 %v242_v17 }
  0x57   : > { %407 = vmatmul.mubr.msk.bf16.vlgmr.msra.gmra.mrb[0].mxu0 %vm216_vm1, %v159_v18 }
 0x12a   : > { %v278_v21 = vpop.f32.mrb[0].mxu0 }
 0x12b   : > { %v284_v22 = vmul.f32 0.4204482, %v278_v21  ;;  %v408_v23 = vpop.f32.mrb[1].mxu0 }
 0x12c   : > { %v281_v24 = vpop.f32.mrb[2].mxu0 }
 0x12d   : > { %v409_v25 = vpop.f32.mrb[3].mxu0  ;;  %v288_v26 = vsel %vm287_vm3, %v284_v22, -1e+30 }
 0x12e   : > { %290 = vmax.xlane.f32.xlu0 %v288_v26 }
 0x1bb   : > { %v291_v27 = vpop.xlane.xlu0 %290 }
 0x1bc   : > { %v292_v28 = vrot.slane %v291_v27, 4 }
 0x1be   : > { %v293_v29 = vmax.f32 %v291_v27, %v292_v28 }
 0x1c0   : > { %v294_v30 = vrot.slane %v293_v29, 2 }
 0x1c2   : > { %v295_v31 = vmax.f32 %v293_v29, %v294_v30 }
 0x1c4   : > { %v296_v32 = vrot.slane %v295_v31, 1 }
 0x1c6   : > { %v297_v33 = vmax.f32 %v295_v31, %v296_v32 }
 0x1c8   : > { %410 = vpush %v297_v33 }
 0x1f9   : > { %s411_s8 = spop %410 }
 0x1fa   : > { %v299_v35 = vstv %s411_s8 }
 0x1fb   : > { %v300_v36 = vmax.f32 %v289_v34, %v299_v35 }
 0x1fd   : > { %302 = vst.msk [vmem:[#allocation2] sm:$0x1] %vm301_vm4, %v300_v36 }
 0x1fe   : > { %467 = shalt.err (!%p464_p13)
}
 0x1ff   : > { %s468_s17 = scalar_lea.hbm %s624_s2, 16 }
 0x200   : > { %p469_p0 = scmp.ne.s32.totalorder %s624_s2, %s468_s17  ;;  %p474_p3 = scmp.lt.u32.totalorder %s468_s17, %s624_s2 }
 0x202   : > { %p470_p1 = pnand %p469_p0, %p587_p6 }
 0x204   : > { %p471_p2 = pneg %p470_p1 }
 0x206   : > { %p476_p4 = pnand %p474_p3, %p471_p2 }
 0x208   : > { %479 = shalt.err (!%p476_p4)
}
 0x209   : > { %413 = dma.vmem_to_hbm [thread:$0]  (%p587_p6), %s311_s7, 16, %s624_s2, [#allocation3]  }
 0x20a   : > { %493 = dma.done.wait (%p587_p6), [#allocation3], 16  }
 0x20b   : > { %495 = vsyncadd (%p587_p6), [#allocation3], 4294967280 }
 0x20c PF: > { %s13_s11 = sadd.s32 1, %s506_s11   ;;  %s626_s9 = smov %s502_s10 }
 0x20d   : > { %p10_p5 = scmp.ge.s32.totalorder %s13_s11, 6   ;;  %s627_s10 = smov %s629_s13 }
 0x20f   :  { %12 = sbr.rel (!%p10_p5) target bundleno = 2 (0x2), region = 59 }
 0x216   :  { %323 = vsyncpa [#allocation3], 1 }
 0x217   :  { %325 = vsyncpa [#allocation3 + $0x1], 1 }

</bundles_post_ra>
